<compile_context>
chip_gen: v6e
topology: v6e:2x2x1
jax: 0.10.0
libtpu: 0.0.40
codegen_flags: <defaults>
</compile_context>

<pallas_src>
import functools

import numpy as np
import jax
import jax.numpy as jnp
from jax.experimental import pallas as pl
from jax.experimental.pallas import tpu as pltpu


# ---------------------------------------------------------------------------
# Pallas kernel: one GraphConv layer,  out = relu((A_hat @ H) @ W + b)
# ---------------------------------------------------------------------------
def _graph_conv_kernel(a_ref, h_ref, w_ref, b_ref, out_ref, acc_ref, *,
                       apply_relu: bool):
    k = pl.program_id(1)

    @pl.when(k == 0)
    def _():
        acc_ref[...] = jnp.zeros_like(acc_ref)

    # Aggregation: accumulate A_hat[i_tile, k_tile] @ H[k_tile]  (bf16 x bf16 -> f32).
    acc_ref[...] += jnp.dot(a_ref[...], h_ref[...],
                            preferred_element_type=jnp.float32)

    @pl.when(k == pl.num_programs(1) - 1)
    def _():
        # Feature transform + bias + activation, fused at the last reduction step.
        y = jnp.dot(acc_ref[...].astype(w_ref.dtype), w_ref[...],
                    preferred_element_type=jnp.float32)
        y = y + b_ref[...]
        if apply_relu:
            y = jnp.maximum(y, 0.0)
        out_ref[...] = y.astype(out_ref.dtype)


def graph_conv_layer(a_hat, h, w, b, *, apply_relu=True,
                     out_dtype=jnp.float32, tile_m=128, tile_k=128):
    """One GraphConv layer.

    a_hat: (N_pad, N_pad) bf16 normalized dense adjacency (rows = dst).
    h:     (N_pad, Din)   bf16 node features.
    w:     (Din, Dout)    bf16 weight (DGL layout, no transpose needed).
    b:     (1, Dout)      f32 bias.
    Returns (N_pad, Dout) in out_dtype.
    """
    n_pad = a_hat.shape[0]
    din = h.shape[1]
    dout = w.shape[1]
    assert n_pad % tile_m == 0 and n_pad % tile_k == 0

    kernel = functools.partial(_graph_conv_kernel, apply_relu=apply_relu)
    return pl.pallas_call(
        kernel,
        out_shape=jax.ShapeDtypeStruct((n_pad, dout), out_dtype),
        grid_spec=pltpu.PrefetchScalarGridSpec(
            num_scalar_prefetch=0,
            grid=(n_pad // tile_m, n_pad // tile_k),
            in_specs=[
                pl.BlockSpec((tile_m, tile_k), lambda i, k: (i, k)),  # A_hat tile
                pl.BlockSpec((tile_k, din), lambda i, k: (k, 0)),     # H rows
                pl.BlockSpec((din, dout), lambda i, k: (0, 0)),       # W (resident)
                pl.BlockSpec((1, dout), lambda i, k: (0, 0)),         # bias (resident)
            ],
            out_specs=pl.BlockSpec((tile_m, dout), lambda i, k: (i, 0)),
            scratch_shapes=[pltpu.VMEM((tile_m, din), jnp.float32)],  # f32 accum
        ),
        compiler_params=pltpu.CompilerParams(
            dimension_semantics=("parallel", "arbitrary")),
    )(a_hat, h, w, b)


# ---------------------------------------------------------------------------
# Encoder = stacked GraphConv layers (all via the Pallas kernel)
# ---------------------------------------------------------------------------
@jax.jit
def graph_conv_encoder_nodes(a_hat_bf16, h0_f32, params):
    """Run the stacked GraphConv layers on padded node features."""
    n_layers = len(params)
    h = h0_f32.astype(jnp.bfloat16)
    for li, (w, b) in enumerate(params):
        last = li == n_layers - 1
        h = graph_conv_layer(
            a_hat_bf16, h, w, b, apply_relu=True,
            out_dtype=jnp.float32 if last else jnp.bfloat16)
    return h  # (N_pad, d_model) f32


def return_batch(h_nodes, batch_num_nodes):
    """Pack node rows into a zero-padded (B, max_len, D) batch (max_len='longest')."""
    bnn = np.asarray(batch_num_nodes, dtype=np.int32)
    max_len = int(bnn.max())
    offsets = np.concatenate([[0], np.cumsum(bnn)[:-1]]).astype(np.int32)
    t = np.arange(max_len, dtype=np.int32)
    idx = offsets[:, None] + t[None, :]                    # (B, max_len)
    idx = np.minimum(idx, h_nodes.shape[0] - 1)
    mask = t[None, :] < bnn[:, None]                       # (B, max_len)
    gathered = jnp.take(h_nodes, jnp.asarray(idx), axis=0)  # (B, max_len, D)
    return jnp.where(jnp.asarray(mask)[:, :, None], gathered, 0.0)


def graph_conv_encoder_forward(a_hat_bf16, h0, params, batch_num_nodes):
    h_nodes = graph_conv_encoder_nodes(a_hat_bf16, h0, params)
    out = return_batch(h_nodes, batch_num_nodes)
    # Inference: nn.Dropout(p) is identity.
    return out


# ---------------------------------------------------------------------------
# Graph preprocessing + parameter init
# ---------------------------------------------------------------------------
def build_normalized_adjacency(src, dst, n_pad):
    """Dense A_hat[dst, src] = clamp(in_deg[dst],1)^-1/2 * clamp(out_deg[src],1)^-1/2."""
    ones = jnp.ones((src.shape[0],), jnp.float32)
    out_deg = jnp.zeros((n_pad,), jnp.float32).at[src].add(ones)
    in_deg = jnp.zeros((n_pad,), jnp.float32).at[dst].add(ones)
    src_norm = 1.0 / jnp.sqrt(jnp.maximum(out_deg, 1.0))
    dst_norm = 1.0 / jnp.sqrt(jnp.maximum(in_deg, 1.0))
    a = jnp.zeros((n_pad, n_pad), jnp.float32).at[dst, src].add(ones)
    return a * dst_norm[:, None] * src_norm[None, :]


def init_graph_conv_params(key, in_feats, d_hidden, d_model, n_layers):
    """GraphConv weights: xavier-uniform (din, dout); bias (1, dout)."""
    dims = [(in_feats, d_hidden)]
    for _ in range(1, n_layers - 1):
        dims.append((d_hidden, d_hidden))
    dims.append((d_hidden, d_model))
    params = []
    for (din, dout) in dims:
        key, kw, kb = jax.random.split(key, 3)
        bound = float(np.sqrt(6.0 / (din + dout)))
        w = jax.random.uniform(kw, (din, dout), jnp.float32, -bound, bound)
        # DGL zero-inits the bias; use a small random bias to exercise that path.
        b = jax.random.uniform(kb, (1, dout), jnp.float32, -0.05, 0.05)
        params.append((w, b))
    return tuple(params)


# ---------------------------------------------------------------------------
# Pure-JAX reference (same math / same bf16 inputs)
# ---------------------------------------------------------------------------
def graph_conv_reference(a_hat_bf16, h0, params, batch_num_nodes):
    n_layers = len(params)
    h = h0.astype(jnp.bfloat16)
    for li, (w, b) in enumerate(params):
        agg = jnp.dot(a_hat_bf16, h, preferred_element_type=jnp.float32)
        y = jnp.dot(agg.astype(jnp.bfloat16), w,
                    preferred_element_type=jnp.float32) + b
        y = jnp.maximum(y, 0.0)
        h = y if li == n_layers - 1 else y.astype(jnp.bfloat16)
    return return_batch(h, batch_num_nodes)


# ---------------------------------------------------------------------------
if __name__ == "__main__":
    # Small config consistent with GraphConvEncoder: first conv has in_feats=20
    # (hardcoded in the module); keep hidden/model dims lane-aligned but small.
    batch_num_nodes = (9, 7)      # 2 graphs, 16 nodes total
    in_feats = 20
    d_hidden = 128
    d_model = 128
    n_layers = 2

    key = jax.random.PRNGKey(0)
    k_feat, k_edge, k_param = jax.random.split(key, 3)

    N = int(sum(batch_num_nodes))
    offsets = np.concatenate([[0], np.cumsum(batch_num_nodes)[:-1]]).astype(np.int32)

    # Deterministic random intra-graph directed edges (~2 per node).
    src_parts, dst_parts = [], []
    ek = k_edge
    for b, nb in enumerate(batch_num_nodes):
        ek, ks, kd = jax.random.split(ek, 3)
        ne = 2 * nb
        src_parts.append(int(offsets[b]) + jax.random.randint(ks, (ne,), 0, nb))
        dst_parts.append(int(offsets[b]) + jax.random.randint(kd, (ne,), 0, nb))
    src = jnp.concatenate(src_parts)
    dst = jnp.concatenate(dst_parts)

    feats = jax.random.normal(k_feat, (N, in_feats), jnp.float32)
    params = init_graph_conv_params(k_param, in_feats, d_hidden, d_model, n_layers)

    # Pad node count to a multiple of 128 (lane/sublane-dense tiles); padded
    # rows/cols of A_hat are zero so they never contaminate real nodes.
    n_pad = max(128, ((N + 127) // 128) * 128)
    a_hat = build_normalized_adjacency(src, dst, n_pad)                 # f32
    h0 = jnp.zeros((n_pad, in_feats), jnp.float32).at[:N].set(feats)

    # bf16 inputs / weights, f32 accumulation.
    a_hat_bf16 = a_hat.astype(jnp.bfloat16)
    params_bf16 = tuple((w.astype(jnp.bfloat16), b) for (w, b) in params)

    out = graph_conv_encoder_forward(a_hat_bf16, h0, params_bf16, batch_num_nodes)
    jax.block_until_ready(out)

    max_len = max(batch_num_nodes)
    assert out.shape == (len(batch_num_nodes), max_len, d_model), out.shape
    assert out.dtype == jnp.float32

    out_ref = graph_conv_reference(a_hat_bf16, h0, params_bf16, batch_num_nodes)
    err = float(jnp.max(jnp.abs(out - out_ref)))
    assert err < 2e-3, f"max abs err {err}"

    print("KERNEL_OK")
</pallas_src>

<mosaic_0001>
module attributes {stable_mosaic.version = 11 : i64} {
  func.func @_graph_conv_kernel(%arg0: i32, %arg1: i32, %arg2: memref<128x128xbf16, #tpu.memory_space<vmem>>, %arg3: memref<128x128xbf16, #tpu.memory_space<vmem>>, %arg4: memref<128x128xbf16, #tpu.memory_space<vmem>>, %arg5: memref<1x128xf32, #tpu.memory_space<vmem>>, %arg6: memref<128x128xf32, #tpu.memory_space<vmem>>, %arg7: memref<128x128xf32, #tpu.memory_space<vmem>>) attributes {dimension_semantics = [#tpu.dimension_semantics<parallel>, #tpu.dimension_semantics<arbitrary>], iteration_bounds = array<i64: 1, 1>, scalar_prefetch = 0 : i64, scratch_operands = 1 : i64, tpu.core_type = #tpu.core_type<tc>, window_params = [{transform_indices = @transform_0, window_bounds = array<i64: 128, 128>}, {transform_indices = @transform_1, window_bounds = array<i64: 128, 128>}, {pipeline_mode = #tpu.pipeline_mode<synchronous>, transform_indices = @transform_2, window_bounds = array<i64: 128, 128>}, {pipeline_mode = #tpu.pipeline_mode<synchronous>, transform_indices = @transform_3, window_bounds = array<i64: 1, 128>}, {transform_indices = @transform_4, window_bounds = array<i64: 128, 128>}]} {
    %c0_i32 = arith.constant 0 : i32
    %0 = arith.cmpi eq, %arg1, %c0_i32 : i32
    %1 = arith.extui %0 : i1 to i32
    %c0_i32_0 = arith.constant 0 : i32
    %2 = arith.cmpi ne, %1, %c0_i32_0 : i32
    scf.if %2 {
      %cst_10 = arith.constant 0.000000e+00 : f32
      %12 = vector.broadcast %cst_10 : f32 to vector<128x128xf32>
      %c0_11 = arith.constant 0 : index
      %c0_12 = arith.constant 0 : index
      %13 = vector.load %arg7[%c0_11, %c0_12] : memref<128x128xf32, #tpu.memory_space<vmem>>, vector<128x128xf32>
      tpu.vector_store %arg7[%c0_11, %c0_12], %12 {strides = array<i32>} : memref<128x128xf32, #tpu.memory_space<vmem>>, vector<128x128xf32>,
    } else {
    }
    %c0 = arith.constant 0 : index
    %c0_1 = arith.constant 0 : index
    %3 = vector.load %arg7[%c0, %c0_1] : memref<128x128xf32, #tpu.memory_space<vmem>>, vector<128x128xf32>
    %c0_2 = arith.constant 0 : index
    %c0_3 = arith.constant 0 : index
    %4 = vector.load %arg2[%c0_2, %c0_3] : memref<128x128xbf16, #tpu.memory_space<vmem>>, vector<128x128xbf16>
    %c0_4 = arith.constant 0 : index
    %c0_5 = arith.constant 0 : index
    %5 = vector.load %arg3[%c0_4, %c0_5] : memref<128x128xbf16, #tpu.memory_space<vmem>>, vector<128x128xbf16>
    %cst = arith.constant dense<0.000000e+00> : vector<128x128xf32>
    %6 = tpu.matmul %4, %5, %cst {dimension_numbers = #tpu.dot_dimension_numbers<[1], [0], [0], [1], [0, 0, 1, 1], [], []>} : vector<128x128xbf16>, vector<128x128xbf16>, vector<128x128xf32> -> vector<128x128xf32>
    %7 = arith.addf %3, %6 : vector<128x128xf32>
    %c0_6 = arith.constant 0 : index
    %c0_7 = arith.constant 0 : index
    %8 = vector.load %arg7[%c0_6, %c0_7] : memref<128x128xf32, #tpu.memory_space<vmem>>, vector<128x128xf32>
    tpu.vector_store %arg7[%c0_6, %c0_7], %7 {strides = array<i32>} : memref<128x128xf32, #tpu.memory_space<vmem>>, vector<128x128xf32>,
    %c0_i32_8 = arith.constant 0 : i32
    %9 = arith.cmpi eq, %arg1, %c0_i32_8 : i32
    %10 = arith.extui %9 : i1 to i32
    %c0_i32_9 = arith.constant 0 : i32
    %11 = arith.cmpi ne, %10, %c0_i32_9 : i32
    scf.if %11 {
      %c0_10 = arith.constant 0 : index
      %c0_11 = arith.constant 0 : index
      %12 = vector.load %arg7[%c0_10, %c0_11] : memref<128x128xf32, #tpu.memory_space<vmem>>, vector<128x128xf32>
      %13 = arith.truncf %12 : vector<128x128xf32> to vector<128x128xbf16>
      %c0_12 = arith.constant 0 : index
      %c0_13 = arith.constant 0 : index
      %14 = vector.load %arg4[%c0_12, %c0_13] : memref<128x128xbf16, #tpu.memory_space<vmem>>, vector<128x128xbf16>
      %cst_14 = arith.constant dense<0.000000e+00> : vector<128x128xf32>
      %15 = tpu.matmul %13, %14, %cst_14 {dimension_numbers = #tpu.dot_dimension_numbers<[1], [0], [0], [1], [0, 0, 1, 1], [], []>} : vector<128x128xbf16>, vector<128x128xbf16>, vector<128x128xf32> -> vector<128x128xf32>
      %c0_15 = arith.constant 0 : index
      %c0_16 = arith.constant 0 : index
      %16 = vector.load %arg5[%c0_15, %c0_16] : memref<1x128xf32, #tpu.memory_space<vmem>>, vector<1x128xf32>
      %17 = vector.broadcast %16 : vector<1x128xf32> to vector<128x128xf32>
      %18 = arith.addf %15, %17 : vector<128x128xf32>
      %cst_17 = arith.constant 0.000000e+00 : f32
      %19 = vector.broadcast %cst_17 : f32 to vector<128x128xf32>
      %20 = arith.maximumf %18, %19 : vector<128x128xf32>
      %c0_18 = arith.constant 0 : index
      %c0_19 = arith.constant 0 : index
      %21 = vector.load %arg6[%c0_18, %c0_19] : memref<128x128xf32, #tpu.memory_space<vmem>>, vector<128x128xf32>
      tpu.vector_store %arg6[%c0_18, %c0_19], %20 {strides = array<i32>} : memref<128x128xf32, #tpu.memory_space<vmem>>, vector<128x128xf32>,
    } else {
    }
    return
  }
  func.func @transform_0(%arg0: i32, %arg1: i32) -> (i32, i32) {
    %c0_i32 = arith.constant 0 : i32
    return %arg0, %arg1 : i32, i32
  }
  func.func @transform_1(%arg0: i32, %arg1: i32) -> (i32, i32) {
    %c0_i32 = arith.constant 0 : i32
    %c0_i32_0 = arith.constant 0 : i32
    return %arg1, %c0_i32 : i32, i32
  }
  func.func @transform_2(%arg0: i32, %arg1: i32) -> (i32, i32) {
    %c0_i32 = arith.constant 0 : i32
    %c0_i32_0 = arith.constant 0 : i32
    %c0_i32_1 = arith.constant 0 : i32
    return %c0_i32, %c0_i32_0 : i32, i32
  }
  func.func @transform_3(%arg0: i32, %arg1: i32) -> (i32, i32) {
    %c0_i32 = arith.constant 0 : i32
    %c0_i32_0 = arith.constant 0 : i32
    %c0_i32_1 = arith.constant 0 : i32
    return %c0_i32, %c0_i32_0 : i32, i32
  }
  func.func @transform_4(%arg0: i32, %arg1: i32) -> (i32, i32) {
    %c0_i32 = arith.constant 0 : i32
    %c0_i32_0 = arith.constant 0 : i32
    return %arg0, %c0_i32 : i32, i32
  }
}

module attributes {stable_mosaic.version = 11 : i64} {
  func.func @_graph_conv_kernel(%arg0: i32, %arg1: i32, %arg2: memref<128x128xbf16, #tpu.memory_space<vmem>>, %arg3: memref<128x20xbf16, #tpu.memory_space<vmem>>, %arg4: memref<20x128xbf16, #tpu.memory_space<vmem>>, %arg5: memref<1x128xf32, #tpu.memory_space<vmem>>, %arg6: memref<128x128xbf16, #tpu.memory_space<vmem>>, %arg7: memref<128x20xf32, #tpu.memory_space<vmem>>) attributes {dimension_semantics = [#tpu.dimension_semantics<parallel>, #tpu.dimension_semantics<arbitrary>], iteration_bounds = array<i64: 1, 1>, scalar_prefetch = 0 : i64, scratch_operands = 1 : i64, tpu.core_type = #tpu.core_type<tc>, window_params = [{transform_indices = @transform_0, window_bounds = array<i64: 128, 128>}, {transform_indices = @transform_1, window_bounds = array<i64: 128, 20>}, {pipeline_mode = #tpu.pipeline_mode<synchronous>, transform_indices = @transform_2, window_bounds = array<i64: 20, 128>}, {pipeline_mode = #tpu.pipeline_mode<synchronous>, transform_indices = @transform_3, window_bounds = array<i64: 1, 128>}, {transform_indices = @transform_4, window_bounds = array<i64: 128, 128>}]} {
    %c0_i32 = arith.constant 0 : i32
    %0 = arith.cmpi eq, %arg1, %c0_i32 : i32
    %1 = arith.extui %0 : i1 to i32
    %c0_i32_0 = arith.constant 0 : i32
    %2 = arith.cmpi ne, %1, %c0_i32_0 : i32
    scf.if %2 {
      %cst_10 = arith.constant 0.000000e+00 : f32
      %12 = vector.broadcast %cst_10 : f32 to vector<128x20xf32>
      %c0_11 = arith.constant 0 : index
      %c0_12 = arith.constant 0 : index
      %13 = vector.load %arg7[%c0_11, %c0_12] : memref<128x20xf32, #tpu.memory_space<vmem>>, vector<128x20xf32>
      tpu.vector_store %arg7[%c0_11, %c0_12], %12 {strides = array<i32>} : memref<128x20xf32, #tpu.memory_space<vmem>>, vector<128x20xf32>,
    } else {
    }
    %c0 = arith.constant 0 : index
    %c0_1 = arith.constant 0 : index
    %3 = vector.load %arg7[%c0, %c0_1] : memref<128x20xf32, #tpu.memory_space<vmem>>, vector<128x20xf32>
    %c0_2 = arith.constant 0 : index
    %c0_3 = arith.constant 0 : index
    %4 = vector.load %arg2[%c0_2, %c0_3] : memref<128x128xbf16, #tpu.memory_space<vmem>>, vector<128x128xbf16>
    %c0_4 = arith.constant 0 : index
    %c0_5 = arith.constant 0 : index
    %5 = vector.load %arg3[%c0_4, %c0_5] : memref<128x20xbf16, #tpu.memory_space<vmem>>, vector<128x20xbf16>
    %cst = arith.constant dense<0.000000e+00> : vector<128x20xf32>
    %6 = tpu.matmul %4, %5, %cst {dimension_numbers = #tpu.dot_dimension_numbers<[1], [0], [0], [1], [0, 0, 1, 1], [], []>} : vector<128x128xbf16>, vector<128x20xbf16>, vector<128x20xf32> -> vector<128x20xf32>
    %7 = arith.addf %3, %6 : vector<128x20xf32>
    %c0_6 = arith.constant 0 : index
    %c0_7 = arith.constant 0 : index
    %8 = vector.load %arg7[%c0_6, %c0_7] : memref<128x20xf32, #tpu.memory_space<vmem>>, vector<128x20xf32>
    tpu.vector_store %arg7[%c0_6, %c0_7], %7 {strides = array<i32>} : memref<128x20xf32, #tpu.memory_space<vmem>>, vector<128x20xf32>,
    %c0_i32_8 = arith.constant 0 : i32
    %9 = arith.cmpi eq, %arg1, %c0_i32_8 : i32
    %10 = arith.extui %9 : i1 to i32
    %c0_i32_9 = arith.constant 0 : i32
    %11 = arith.cmpi ne, %10, %c0_i32_9 : i32
    scf.if %11 {
      %c0_10 = arith.constant 0 : index
      %c0_11 = arith.constant 0 : index
      %12 = vector.load %arg7[%c0_10, %c0_11] : memref<128x20xf32, #tpu.memory_space<vmem>>, vector<128x20xf32>
      %13 = arith.truncf %12 : vector<128x20xf32> to vector<128x20xbf16>
      %c0_12 = arith.constant 0 : index
      %c0_13 = arith.constant 0 : index
      %14 = vector.load %arg4[%c0_12, %c0_13] : memref<20x128xbf16, #tpu.memory_space<vmem>>, vector<20x128xbf16>
      %cst_14 = arith.constant dense<0.000000e+00> : vector<128x128xf32>
      %15 = tpu.matmul %13, %14, %cst_14 {dimension_numbers = #tpu.dot_dimension_numbers<[1], [0], [0], [1], [0, 0, 1, 1], [], []>} : vector<128x20xbf16>, vector<20x128xbf16>, vector<128x128xf32> -> vector<128x128xf32>
      %c0_15 = arith.constant 0 : index
      %c0_16 = arith.constant 0 : index
      %16 = vector.load %arg5[%c0_15, %c0_16] : memref<1x128xf32, #tpu.memory_space<vmem>>, vector<1x128xf32>
      %17 = vector.broadcast %16 : vector<1x128xf32> to vector<128x128xf32>
      %18 = arith.addf %15, %17 : vector<128x128xf32>
      %cst_17 = arith.constant 0.000000e+00 : f32
      %19 = vector.broadcast %cst_17 : f32 to vector<128x128xf32>
      %20 = arith.maximumf %18, %19 : vector<128x128xf32>
      %21 = arith.truncf %20 : vector<128x128xf32> to vector<128x128xbf16>
      %c0_18 = arith.constant 0 : index
      %c0_19 = arith.constant 0 : index
      %22 = vector.load %arg6[%c0_18, %c0_19] : memref<128x128xbf16, #tpu.memory_space<vmem>>, vector<128x128xbf16>
      tpu.vector_store %arg6[%c0_18, %c0_19], %21 {strides = array<i32>} : memref<128x128xbf16, #tpu.memory_space<vmem>>, vector<128x128xbf16>,
    } else {
    }
    return
  }
  func.func @transform_0(%arg0: i32, %arg1: i32) -> (i32, i32) {
    %c0_i32 = arith.constant 0 : i32
    return %arg0, %arg1 : i32, i32
  }
  func.func @transform_1(%arg0: i32, %arg1: i32) -> (i32, i32) {
    %c0_i32 = arith.constant 0 : i32
    %c0_i32_0 = arith.constant 0 : i32
    return %arg1, %c0_i32 : i32, i32
  }
  func.func @transform_2(%arg0: i32, %arg1: i32) -> (i32, i32) {
    %c0_i32 = arith.constant 0 : i32
    %c0_i32_0 = arith.constant 0 : i32
    %c0_i32_1 = arith.constant 0 : i32
    return %c0_i32, %c0_i32_0 : i32, i32
  }
  func.func @transform_3(%arg0: i32, %arg1: i32) -> (i32, i32) {
    %c0_i32 = arith.constant 0 : i32
    %c0_i32_0 = arith.constant 0 : i32
    %c0_i32_1 = arith.constant 0 : i32
    return %c0_i32, %c0_i32_0 : i32, i32
  }
  func.func @transform_4(%arg0: i32, %arg1: i32) -> (i32, i32) {
    %c0_i32 = arith.constant 0 : i32
    %c0_i32_0 = arith.constant 0 : i32
    return %arg0, %c0_i32 : i32, i32
  }
}

</mosaic_0001>

<bundles_post_ra>
// kernel: graph_conv_encoder_nodes.3
= control target key start
LH: loop header
LB: loop body
LE: loop exit
PB: predicated region body
PF: predicated region fallthrough
CT: control target
= control target key end

     0   :  { %s849_s0 = inlined_call_operand.vmem [shape: bf16[128,128], index: 0, kind: input, shape index: {}]   ;;  %s850_s1 = inlined_call_operand.vmem [shape: bf16[128,128], index: 1, kind: input, shape index: {}]   ;;  %s851_s2 = inlined_call_operand.vmem [shape: bf16[128,128], index: 2, kind: input, shape index: {}]   ;;  %s852_s3 = inlined_call_operand.vmem [shape: f32[1,128], index: 3, kind: input, shape index: {}]   ;;  %s853_s4 = inlined_call_operand.hbm [shape: f32[128,128], index: 4, kind: output, shape index: {}]  }
   0x1   :  { %v679_v0 = vld [vmem:[%s850_s1 + $0x38] sm:$0xff]   ;;  %v680_v1 = vld [vmem:[%s850_s1 + $0x30] sm:$0xff]   ;;  %v681_v2 = vld [vmem:[%s850_s1 + $0x28] sm:$0xff]  }
   0x2   :  { %612 = vmatprep.subr.bf16.mxu0 %v679_v0  ;;  %v682_v3 = vld [vmem:[%s850_s1 + $0x20] sm:$0xff]   ;;  %v683_v5 = vld [vmem:[%s850_s1 + $0x18] sm:$0xff]   ;;  %v684_v6 = vld [vmem:[%s850_s1 + $0x10] sm:$0xff]  }
   0x3   :  { %613 = vmatpush3.bf16.msra.mxu0 %v679_v0  ;;  %v687_v4 = vld [vmem:[%s849_s0] sm:$0xff]   ;;  %v695_v7 = vld [vmem:[%s851_s2 + $0x38] sm:$0xff]   ;;  %v696_v8 = vld [vmem:[%s851_s2 + $0x30] sm:$0xff]  }
   0x4   :  { %614 = vmatprep.subr.bf16.mxu0 %v680_v1  ;;  %628 = vmatprep.mubr.bf16.mxu0 %v687_v4  ;;  %v685_v9 = vld [vmem:[%s850_s1 + $0x8] sm:$0xff]  }
   0x5   :  { %644 = vmatprep.subr.bf16.mxu1 %v695_v7  ;;  %v697_v10 = vld [vmem:[%s851_s2 + $0x28] sm:$0xff]  }
   0x6   :  { %645 = vmatpush3.bf16.msra.mxu1 %v695_v7 }
   0x7   :  { %615 = vmatpush3.bf16.msra.mxu0 %v680_v1  ;;  %646 = vmatprep.subr.bf16.mxu1 %v696_v8 }
   0x8   :  { %616 = vmatprep.subr.bf16.mxu0 %v681_v2 }
   0xa   :  { %647 = vmatpush3.bf16.msra.mxu1 %v696_v8 }
   0xb   :  { %617 = vmatpush3.bf16.msra.mxu0 %v681_v2 }
   0xc   :  { %618 = vmatprep.subr.bf16.mxu0 %v682_v3 }
   0xf   :  { %619 = vmatpush3.bf16.msra.mxu0 %v682_v3 }
  0x10   :  { %620 = vmatprep.subr.bf16.mxu0 %v683_v5 }
  0x13   :  { %621 = vmatpush3.bf16.msra.mxu0 %v683_v5 }
  0x14   :  { %622 = vmatprep.subr.bf16.mxu0 %v684_v6 }
  0x17   :  { %623 = vmatpush3.bf16.msra.mxu0 %v684_v6 }
  0x18   :  { %9 = vsyncpa [#allocation4], 0  ;;  %624 = vmatprep.subr.bf16.mxu0 %v685_v9  ;;  %v686_v11 = vld [vmem:[%s850_s1] sm:$0xff]   ;;  %648 = vmatprep.subr.bf16.mxu1 %v697_v10  ;;  %v699_v13 = vld [vmem:[%s851_s2 + $0x18] sm:$0xff]  }
  0x19   :  { %v698_v12 = vld [vmem:[%s851_s2 + $0x20] sm:$0xff]   ;;  %649 = vmatpush3.bf16.msra.mxu1 %v697_v10  ;;  %v688_v14 = vld [vmem:[%s849_s0 + $0x8] sm:$0xff]   ;;  %v689_v15 = vld [vmem:[%s849_s0 + $0x10] sm:$0xff]  }
  0x1a   :  { %650 = vmatprep.subr.bf16.mxu1 %v698_v12  ;;  %v700_v16 = vld [vmem:[%s851_s2 + $0x10] sm:$0xff]   ;;  %v690_v17 = vld [vmem:[%s849_s0 + $0x18] sm:$0xff]   ;;  %v691_v18 = vld [vmem:[%s849_s0 + $0x20] sm:$0xff]  }
  0x1b   :  { %625 = vmatpush3.bf16.msra.mxu0 %v685_v9  ;;  %v692_v19 = vld [vmem:[%s849_s0 + $0x28] sm:$0xff]   ;;  %v693_v20 = vld [vmem:[%s849_s0 + $0x30] sm:$0xff]   ;;  %v694_v21 = vld [vmem:[%s849_s0 + $0x38] sm:$0xff]  }
  0x1c   :  { %626 = vmatprep.subr.bf16.mxu0 %v686_v11  ;;  %v701_v22 = vld [vmem:[%s851_s2 + $0x8] sm:$0xff]   ;;  %v702_v23 = vld [vmem:[%s851_s2] sm:$0xff]  }
  0x1d   :  { %651 = vmatpush3.bf16.msra.mxu1 %v698_v12  ;;  %v828_v48 = vld [vmem:[%s852_s3] ss:$0 sm:$0xff]  ;;  %s725_s3 = smov [#allocation3]  }
  0x1e   :  { %652 = vmatprep.subr.bf16.mxu1 %v699_v13  ;;  %s544_s10 = sshll.u32 %s725_s3, 4  ;;  %s545_s10 = int_to_ptr.vmem [resolvable:$true] %s544_s10 }
  0x1f   :  { %627 = vmatpush3.bf16.msra.mxu0 %v686_v11  ;;  %s703_s11 = scalar_lea.vmem %s545_s10, 2048  ;;  %p708_p1 = scmp.lt.s32.totalorder %s545_s10, %s545_s10 }
  0x20   :  { %p704_p0 = scmp.ne.s32.totalorder %s545_s10, %s703_s11  ;;  %p709_p2 = scmp.lt.s32.totalorder %s703_s11, %s703_s11 }
  0x21   :  { %653 = vmatpush3.bf16.msra.mxu1 %v699_v13 }
  0x22   :  { %629 = vmatmul.mubr.bf16.vlgmr.msra.gmra.mxu0 %v688_v14  ;;  %654 = vmatprep.subr.bf16.mxu1 %v700_v16  ;;  %p710_p3 = por %p709_p2, %p708_p1 }
  0x23   :  { %632 = vmatprep.mubr.bf16.mxu0 %v689_v15 }
  0x24   :  { %p711_p4 = pnand %p710_p3, %p704_p0 }
  0x25   :  { %655 = vmatpush3.bf16.msra.mxu1 %v700_v16 }
  0x26   :  { %656 = vmatprep.subr.bf16.mxu1 %v701_v22 }
  0x29   :  { %657 = vmatpush3.bf16.msra.mxu1 %v701_v22 }
  0x2a   :  { %633 = vmatmul.mubr.bf16.gmra.mxu0 %v690_v17  ;;  %658 = vmatprep.subr.bf16.mxu1 %v702_v23 }
  0x2b   :  { %636 = vmatprep.mubr.bf16.mxu0 %v691_v18 }
  0x2d   :  { %659 = vmatpush3.bf16.msra.mxu1 %v702_v23 }
  0x32   :  { %637 = vmatmul.mubr.bf16.gmra.mxu0 %v692_v19 }
  0x33   :  { %640 = vmatprep.mubr.bf16.mxu0 %v693_v20 }
  0x3a   :  { %641 = vmatmul.mubr.bf16.gmra.mxu0 %v694_v21 }
  0xe2   :  { %v630_v24 = vpop.f32.mrf.mxu0 }
  0xe4   :  { %v217_v25 = vpop.f32.mrf.mxu0 }
  0xe6   :  { %v631_v26 = vpop.f32.mrf.mxu0 }
  0xe7   :  { %v332_v29 = vpack.c.bf16 %v631_v26, %v630_v24 }
  0xe8   :  { %v220_v27 = vpop.f32.mrf.mxu0 }
  0xe9   :  { %v331_v28 = vpack.c.bf16 %v220_v27, %v217_v25 }
  0xea   :  { %v634_v30 = vpop.f32.mrf.mxu0 }
  0xeb   :  { %660 = vmatprep.mubr.bf16.mxu1 %v331_v28 }
  0xec   :  { %v233_v31 = vpop.f32.mrf.mxu0  ;;  %661 = vmatmul.mubr.bf16.vlgmr.msra.gmra.mxu1 %v332_v29 }
  0xee   :  { %v635_v32 = vpop.f32.mrf.mxu0 }
  0xef   :  { %v334_v35 = vpack.c.bf16 %v635_v32, %v634_v30 }
  0xf0   :  { %v236_v33 = vpop.f32.mrf.mxu0 }
  0xf1   :  { %v333_v34 = vpack.c.bf16 %v236_v33, %v233_v31 }
  0xf2   :  { %v638_v36 = vpop.f32.mrf.mxu0 }
  0xf3   :  { %664 = vmatprep.mubr.bf16.mxu1 %v333_v34 }
  0xf4   :  { %v249_v37 = vpop.f32.mrf.mxu0  ;;  %665 = vmatmul.mubr.bf16.gmra.mxu1 %v334_v35 }
  0xf6   :  { %v639_v38 = vpop.f32.mrf.mxu0 }
  0xf7   :  { %v336_v41 = vpack.c.bf16 %v639_v38, %v638_v36 }
  0xf8   :  { %v252_v39 = vpop.f32.mrf.mxu0 }
  0xf9   :  { %v335_v40 = vpack.c.bf16 %v252_v39, %v249_v37 }
  0xfa   :  { %v642_v42 = vpop.f32.mrf.mxu0 }
  0xfb   :  { %668 = vmatprep.mubr.bf16.mxu1 %v335_v40 }
  0xfc   :  { %v265_v43 = vpop.f32.mrf.mxu0  ;;  %669 = vmatmul.mubr.bf16.gmra.mxu1 %v336_v41 }
  0xfe   :  { %v643_v44 = vpop.f32.mrf.mxu0 }
  0xff   :  { %v338_v47 = vpack.c.bf16 %v643_v44, %v642_v42 }
 0x100   :  { %v268_v45 = vpop.f32.mrf.mxu0 }
 0x101   :  { %v337_v46 = vpack.c.bf16 %v268_v45, %v265_v43 }
 0x103   :  { %672 = vmatprep.mubr.bf16.mxu1 %v337_v46 }
 0x104   :  { %673 = vmatmul.mubr.bf16.gmra.mxu1 %v338_v47 }
 0x1ac   :  { %v662_v49 = vpop.f32.mrf.mxu1 }
 0x1ad   :  { %v453_v50 = vadd.f32 %v662_v49, %v828_v48 }
 0x1ae   :  { %v444_v51 = vpop.f32.mrf.mxu1 }
 0x1af   :  { %v509_v52 = vmax.f32 %v453_v50, 0.0  ;;  %v445_v53 = vadd.f32 %v828_v48, %v444_v51 }
 0x1b0   :  { %v663_v54 = vpop.f32.mrf.mxu1 }
 0x1b1   :  { %525 = vst [vmem:[#allocation3 + $0x10] sm:$0xff] %v509_v52  ;;  %v507_v55 = vmax.f32 %v445_v53, 0.0  ;;  %v456_v56 = vadd.f32 %v663_v54, %v828_v48 }
 0x1b2   :  { %v447_v57 = vpop.f32.mrf.mxu1 }
 0x1b3   :  { %523 = vst [vmem:[#allocation3] sm:$0xff] %v507_v55  ;;  %v510_v58 = vmax.f32 %v456_v56, 0.0  ;;  %v448_v59 = vadd.f32 %v828_v48, %v447_v57 }
 0x1b4   :  { %v666_v60 = vpop.f32.mrf.mxu1 }
 0x1b5   :  { %526 = vst [vmem:[#allocation3 + $0x18] sm:$0xff] %v510_v58  ;;  %v508_v61 = vmax.f32 %v448_v59, 0.0  ;;  %v469_v62 = vadd.f32 %v666_v60, %v828_v48 }
 0x1b6   :  { %v460_v63 = vpop.f32.mrf.mxu1 }
 0x1b7   :  { %524 = vst [vmem:[#allocation3 + $0x8] sm:$0xff] %v508_v61  ;;  %v513_v0 = vmax.f32 %v469_v62, 0.0  ;;  %v461_v1 = vadd.f32 %v828_v48, %v460_v63 }
 0x1b8   :  { %v667_v2 = vpop.f32.mrf.mxu1 }
 0x1b9   :  { %529 = vst [vmem:[#allocation3 + $0x30] sm:$0xff] %v513_v0  ;;  %v511_v3 = vmax.f32 %v461_v1, 0.0  ;;  %v472_v4 = vadd.f32 %v667_v2, %v828_v48 }
 0x1ba   :  { %v463_v5 = vpop.f32.mrf.mxu1 }
 0x1bb   :  { %527 = vst [vmem:[#allocation3 + $0x20] sm:$0xff] %v511_v3  ;;  %v514_v6 = vmax.f32 %v472_v4, 0.0  ;;  %v464_v7 = vadd.f32 %v828_v48, %v463_v5 }
 0x1bc   :  { %v670_v8 = vpop.f32.mrf.mxu1 }
 0x1bd   :  { %530 = vst [vmem:[#allocation3 + $0x38] sm:$0xff] %v514_v6  ;;  %v512_v9 = vmax.f32 %v464_v7, 0.0  ;;  %v485_v10 = vadd.f32 %v670_v8, %v828_v48 }
 0x1be   :  { %v476_v11 = vpop.f32.mrf.mxu1 }
 0x1bf   :  { %528 = vst [vmem:[#allocation3 + $0x28] sm:$0xff] %v512_v9  ;;  %v517_v12 = vmax.f32 %v485_v10, 0.0  ;;  %v477_v13 = vadd.f32 %v828_v48, %v476_v11 }
 0x1c0   :  { %v671_v14 = vpop.f32.mrf.mxu1 }
 0x1c1   :  { %533 = vst [vmem:[#allocation3 + $0x50] sm:$0xff] %v517_v12  ;;  %v515_v15 = vmax.f32 %v477_v13, 0.0  ;;  %v488_v16 = vadd.f32 %v671_v14, %v828_v48 }
 0x1c2   :  { %v479_v17 = vpop.f32.mrf.mxu1 }
 0x1c3   :  { %531 = vst [vmem:[#allocation3 + $0x40] sm:$0xff] %v515_v15  ;;  %v518_v18 = vmax.f32 %v488_v16, 0.0  ;;  %v480_v19 = vadd.f32 %v828_v48, %v479_v17 }
 0x1c4   :  { %v674_v20 = vpop.f32.mrf.mxu1 }
 0x1c5   :  { %534 = vst [vmem:[#allocation3 + $0x58] sm:$0xff] %v518_v18  ;;  %v516_v21 = vmax.f32 %v480_v19, 0.0  ;;  %v501_v22 = vadd.f32 %v674_v20, %v828_v48 }
 0x1c6   :  { %v492_v23 = vpop.f32.mrf.mxu1 }
 0x1c7   :  { %532 = vst [vmem:[#allocation3 + $0x48] sm:$0xff] %v516_v21  ;;  %v521_v24 = vmax.f32 %v501_v22, 0.0  ;;  %v493_v25 = vadd.f32 %v828_v48, %v492_v23 }
 0x1c8   :  { %v675_v26 = vpop.f32.mrf.mxu1 }
 0x1c9   :  { %537 = vst [vmem:[#allocation3 + $0x70] sm:$0xff] %v521_v24  ;;  %v519_v27 = vmax.f32 %v493_v25, 0.0  ;;  %v504_v28 = vadd.f32 %v675_v26, %v828_v48 }
 0x1ca   :  { %v495_v29 = vpop.f32.mrf.mxu1 }
 0x1cb   :  { %535 = vst [vmem:[#allocation3 + $0x60] sm:$0xff] %v519_v27  ;;  %v522_v30 = vmax.f32 %v504_v28, 0.0  ;;  %v496_v31 = vadd.f32 %v828_v48, %v495_v29 }
 0x1cd   :  { %538 = vst [vmem:[#allocation3 + $0x78] sm:$0xff] %v522_v30  ;;  %v520_v32 = vmax.f32 %v496_v31, 0.0 }
 0x1cf   :  { %536 = vst [vmem:[#allocation3 + $0x68] sm:$0xff] %v520_v32 }
 0x1d0   :  { %714 = shalt.err (!%p711_p4)
}
 0x1d1   :  { %s726_s12 = smov 128   ;;  %s727_s13 = smov 8  }
 0x1d2   :  { %550 = dma.vmem_to_hbm [thread:$0]  %s545_s10, 2048, %s853_s4, [#allocation4], %s726_s12, %s726_s12, %s727_s13  }
 0x1d3   :  { %723 = dma.done.wait [#allocation4], 2048  }
 0x1d4   :  { %724 = vsyncadd [#allocation4], 4294965248 }
 0x1d5   :  { %554 = vsyncpa [#allocation4], 1 }

// kernel: graph_conv_encoder_nodes.2
= control target key start
LH: loop header
LB: loop body
LE: loop exit
PB: predicated region body
PF: predicated region fallthrough
CT: control target
= control target key end

     0   :  { %vm22_vm0 = vcmask 162816   ;;  %v788_v1 = vmov 0.0   ;;  %vm383_vm1 = vcmask 1041408   ;;  %s935_s1 = inlined_call_operand.vmem [shape: bf16[128,20], index: 1, kind: input, shape index: {}]   ;;  %s936_s0 = inlined_call_operand.vmem [shape: bf16[128,128], index: 0, kind: input, shape index: {}]   ;;  %s937_s2 = inlined_call_operand.vmem [shape: bf16[20,128], index: 2, kind: input, shape index: {}]   ;;  %s938_s3 = inlined_call_operand.vmem [shape: f32[1,128], index: 3, kind: input, shape index: {}]   ;;  %s939_s4 = inlined_call_operand.vmem [shape: bf16[128,128], index: 4, kind: output, shape index: {}]  }
   0x1   :  { %v770_v0 = vld [vmem:[%s935_s1 + $0x38] sm:$0xff]   ;;  %25 = vst.msk [vmem:[#allocation2 + $0x10] sm:$0xff] %vm22_vm0, %v788_v1  ;;  %23 = vst.msk [vmem:[#allocation2] sm:$0xff] %vm22_vm0, %v788_v1  ;;  %v771_v2 = vld [vmem:[%s935_s1 + $0x30] sm:$0xff]  }
   0x2   :  { %24 = vst.msk [vmem:[#allocation2 + $0x8] sm:$0xff] %vm22_vm0, %v788_v1  ;;  %26 = vst.msk [vmem:[#allocation2 + $0x18] sm:$0xff] %vm22_vm0, %v788_v1  ;;  %716 = vmatprep.subr.bf16.mxu0 %v770_v0  ;;  %v772_v3 = vld [vmem:[%s935_s1 + $0x28] sm:$0xff]   ;;  %v773_v4 = vld [vmem:[%s935_s1 + $0x20] sm:$0xff]  }
   0x3   :  { %27 = vst.msk [vmem:[#allocation2 + $0x20] sm:$0xff] %vm22_vm0, %v788_v1  ;;  %28 = vst.msk [vmem:[#allocation2 + $0x28] sm:$0xff] %vm22_vm0, %v788_v1  ;;  %717 = vmatpush3.bf16.msra.mxu0 %v770_v0  ;;  %v778_v5 = vld [vmem:[%s936_s0] sm:$0xff]   ;;  %v774_v6 = vld [vmem:[%s935_s1 + $0x18] sm:$0xff]  }
   0x4   :  { %29 = vst.msk [vmem:[#allocation2 + $0x30] sm:$0xff] %vm22_vm0, %v788_v1  ;;  %30 = vst.msk [vmem:[#allocation2 + $0x38] sm:$0xff] %vm22_vm0, %v788_v1  ;;  %718 = vmatprep.subr.bf16.mxu0 %v771_v2  ;;  %732 = vmatprep.mubr.bf16.mxu0 %v778_v5  ;;  %v775_v7 = vld [vmem:[%s935_s1 + $0x10] sm:$0xff]   ;;  %v776_v8 = vld [vmem:[%s935_s1 + $0x8] sm:$0xff]  }
   0x5   :  { %31 = vst.msk [vmem:[#allocation2 + $0x40] sm:$0xff] %vm22_vm0, %v788_v1  ;;  %32 = vst.msk [vmem:[#allocation2 + $0x48] sm:$0xff] %vm22_vm0, %v788_v1  ;;  %v777_v9 = vld [vmem:[%s935_s1] sm:$0xff]   ;;  %v779_v10 = vld [vmem:[%s936_s0 + $0x8] sm:$0xff]  }
   0x6   :  { %33 = vst.msk [vmem:[#allocation2 + $0x50] sm:$0xff] %vm22_vm0, %v788_v1  ;;  %34 = vst.msk [vmem:[#allocation2 + $0x58] sm:$0xff] %vm22_vm0, %v788_v1  ;;  %v780_v11 = vld [vmem:[%s936_s0 + $0x10] sm:$0xff]   ;;  %v781_v12 = vld [vmem:[%s936_s0 + $0x18] sm:$0xff]  }
   0x7   :  { %35 = vst.msk [vmem:[#allocation2 + $0x60] sm:$0xff] %vm22_vm0, %v788_v1  ;;  %36 = vst.msk [vmem:[#allocation2 + $0x68] sm:$0xff] %vm22_vm0, %v788_v1  ;;  %719 = vmatpush3.bf16.msra.mxu0 %v771_v2  ;;  %v782_v13 = vld [vmem:[%s936_s0 + $0x20] sm:$0xff]   ;;  %v783_v14 = vld [vmem:[%s936_s0 + $0x28] sm:$0xff]  }
   0x8   :  { %37 = vst.msk [vmem:[#allocation2 + $0x70] sm:$0xff] %vm22_vm0, %v788_v1  ;;  %38 = vst.msk [vmem:[#allocation2 + $0x78] sm:$0xff] %vm22_vm0, %v788_v1  ;;  %720 = vmatprep.subr.bf16.mxu0 %v772_v3  ;;  %v784_v15 = vld [vmem:[%s936_s0 + $0x30] sm:$0xff]   ;;  %v785_v16 = vld [vmem:[%s936_s0 + $0x38] sm:$0xff]  }
   0x9   :  { %v786_v17 = vld [vmem:[%s937_s2 + $0x8] ss:$0 sps:$4 sm:$0x33]   ;;  %v787_v19 = vld [vmem:[%s937_s2] sm:$0xff]   ;;  %v41_v20 = vld [vmem:[#allocation2 + $0x10] sm:$0xff] }
   0xa   :  { %768 = vmatprep.subr.msk.bf16.mxu1 %vm383_vm1, %v786_v17  ;;  %v385_v18 = vsel %vm383_vm1, %v786_v17, 0  ;;  %v39_v22 = vld [vmem:[#allocation2] sm:$0xff]  ;;  %v42_v25 = vld [vmem:[#allocation2 + $0x18] sm:$0xff]  ;;  %v40_v28 = vld [vmem:[#allocation2 + $0x8] sm:$0xff] }
   0xb   :  { %721 = vmatpush3.bf16.msra.mxu0 %v772_v3  ;;  %749 = vmatpush3.bf16.msra.mxu1 %v385_v18  ;;  %v45_v31 = vld [vmem:[#allocation2 + $0x30] sm:$0xff]  ;;  %v43_v34 = vld [vmem:[#allocation2 + $0x20] sm:$0xff]  ;;  %v46_v37 = vld [vmem:[#allocation2 + $0x38] sm:$0xff] }
   0xc   :  { %722 = vmatprep.subr.bf16.mxu0 %v773_v4  ;;  %750 = vmatprep.subr.bf16.mxu1 %v787_v19  ;;  %v44_v40 = vld [vmem:[#allocation2 + $0x28] sm:$0xff]  ;;  %v47_v47 = vld [vmem:[#allocation2 + $0x40] sm:$0xff] }
   0xd   :  { %v49_v43 = vld [vmem:[#allocation2 + $0x50] sm:$0xff]  ;;  %v50_v54 = vld [vmem:[#allocation2 + $0x58] sm:$0xff]  ;;  %v48_v58 = vld [vmem:[#allocation2 + $0x48] sm:$0xff] }
   0xe   :  { %v51_v1 = vld [vmem:[#allocation2 + $0x60] sm:$0xff] }
   0xf   :  { %723 = vmatpush3.bf16.msra.mxu0 %v773_v4  ;;  %751 = vmatpush3.bf16.msra.mxu1 %v787_v19  ;;  %v53_v61 = vld [vmem:[#allocation2 + $0x70] sm:$0xff] }
  0x10   :  { %724 = vmatprep.subr.bf16.mxu0 %v774_v6 }
  0x13   :  { %725 = vmatpush3.bf16.msra.mxu0 %v774_v6 }
  0x14   :  { %726 = vmatprep.subr.bf16.mxu0 %v775_v7 }
  0x17   :  { %727 = vmatpush3.bf16.msra.mxu0 %v775_v7 }
  0x18   :  { %728 = vmatprep.subr.bf16.mxu0 %v776_v8 }
  0x1b   :  { %729 = vmatpush3.bf16.msra.mxu0 %v776_v8  ;;  %v54_v8 = vld [vmem:[#allocation2 + $0x78] sm:$0xff] }
  0x1c   :  { %730 = vmatprep.subr.bf16.mxu0 %v777_v9 }
  0x1f   :  { %731 = vmatpush3.bf16.msra.mxu0 %v777_v9 }
  0x22   :  { %733 = vmatmul.mubr.bf16.vlgmr.msra.gmra.mxu0 %v779_v10 }
  0x23   :  { %736 = vmatprep.mubr.bf16.mxu0 %v780_v11 }
  0x2a   :  { %737 = vmatmul.mubr.bf16.gmra.mxu0 %v781_v12  ;;  %v52_v12 = vld [vmem:[#allocation2 + $0x68] sm:$0xff] }
  0x2b   :  { %740 = vmatprep.mubr.bf16.mxu0 %v782_v13 }
  0x32   :  { %741 = vmatmul.mubr.bf16.gmra.mxu0 %v783_v14 }
  0x33   :  { %744 = vmatprep.mubr.bf16.mxu0 %v784_v15 }
  0x3a   :  { %745 = vmatmul.mubr.bf16.gmra.mxu0 %v785_v16 }
  0xe2   :  { %v734_v21 = vpop.f32.mrf.mxu0 }
  0xe3   :  { %v282_v23 = vadd.f32 %v734_v21, %v41_v20 }
  0xe4   :  { %v217_v24 = vpop.f32.mrf.mxu0 }
  0xe5   :  { %299 = vst.msk [vmem:[#allocation2 + $0x10] sm:$0xff] %vm22_vm0, %v282_v23  ;;  %v280_v26 = vadd.f32 %v217_v24, %v39_v22 }
  0xe6   :  { %v735_v27 = vpop.f32.mrf.mxu0 }
  0xe7   :  { %297 = vst.msk [vmem:[#allocation2] sm:$0xff] %vm22_vm0, %v280_v26  ;;  %v283_v29 = vadd.f32 %v735_v27, %v42_v25 }
  0xe8   :  { %v220_v30 = vpop.f32.mrf.mxu0 }
  0xe9   :  { %300 = vst.msk [vmem:[#allocation2 + $0x18] sm:$0xff] %vm22_vm0, %v283_v29  ;;  %v281_v32 = vadd.f32 %v220_v30, %v40_v28  ;;  %v600_v29 = vld [vmem:[%s938_s3] ss:$0 sm:$0xff] }
  0xea   :  { %v738_v33 = vpop.f32.mrf.mxu0 }
  0xeb   :  { %298 = vst.msk [vmem:[#allocation2 + $0x8] sm:$0xff] %vm22_vm0, %v281_v32  ;;  %v286_v35 = vadd.f32 %v738_v33, %v45_v31 }
  0xec   :  { %v233_v36 = vpop.f32.mrf.mxu0  ;;  %v318_v52 = vld [vmem:[#allocation2 + $0x10] sm:$0xff] }
  0xed   :  { %303 = vst.msk [vmem:[#allocation2 + $0x30] sm:$0xff] %vm22_vm0, %v286_v35  ;;  %v284_v38 = vadd.f32 %v233_v36, %v43_v34 }
  0xee   :  { %v739_v39 = vpop.f32.mrf.mxu0  ;;  %v316_v48 = vld [vmem:[#allocation2] sm:$0xff] }
  0xef   :  { %301 = vst.msk [vmem:[#allocation2 + $0x20] sm:$0xff] %vm22_vm0, %v284_v38  ;;  %v287_v41 = vadd.f32 %v739_v39, %v46_v37 }
  0xf0   :  { %v236_v42 = vpop.f32.mrf.mxu0  ;;  %v319_v45 = vld [vmem:[#allocation2 + $0x18] sm:$0xff] }
  0xf1   :  { %304 = vst.msk [vmem:[#allocation2 + $0x38] sm:$0xff] %vm22_vm0, %v287_v41  ;;  %v285_v44 = vadd.f32 %v236_v42, %v44_v40  ;;  %v333_v55 = vpack.c.bf16 %v319_v45, %v318_v52 }
  0xf2   :  { %v742_v46 = vpop.f32.mrf.mxu0  ;;  %v317_v49 = vld [vmem:[#allocation2 + $0x8] sm:$0xff] }
  0xf3   :  { %302 = vst.msk [vmem:[#allocation2 + $0x28] sm:$0xff] %vm22_vm0, %v285_v44  ;;  %v290_v50 = vadd.f32 %v742_v46, %v49_v43  ;;  %v332_v51 = vpack.c.bf16 %v317_v49, %v316_v48 }
  0xf4   :  { %v249_v53 = vpop.f32.mrf.mxu0  ;;  %v322_v6 = vld [vmem:[#allocation2 + $0x30] sm:$0xff] }
  0xf5   :  { %307 = vst.msk [vmem:[#allocation2 + $0x50] sm:$0xff] %vm22_vm0, %v290_v50  ;;  %v288_v56 = vadd.f32 %v249_v53, %v47_v47  ;;  %752 = vmatprep.mubr.msk.bf16.mxu1 %vm22_vm0, %v332_v51 }
  0xf6   :  { %v743_v57 = vpop.f32.mrf.mxu0  ;;  %753 = vmatmul.mubr.msk.bf16.vlgmr.msra.gmra.mxu1 %vm22_vm0, %v333_v55  ;;  %v320_v2 = vld [vmem:[#allocation2 + $0x20] sm:$0xff] }
  0xf7   :  { %305 = vst.msk [vmem:[#allocation2 + $0x40] sm:$0xff] %vm22_vm0, %v288_v56  ;;  %v291_v59 = vadd.f32 %v743_v57, %v50_v54 }
  0xf8   :  { %v252_v60 = vpop.f32.mrf.mxu0  ;;  %v323_v63 = vld [vmem:[#allocation2 + $0x38] sm:$0xff] }
  0xf9   :  { %308 = vst.msk [vmem:[#allocation2 + $0x58] sm:$0xff] %vm22_vm0, %v291_v59  ;;  %v289_v62 = vadd.f32 %v252_v60, %v48_v58  ;;  %v335_v9 = vpack.c.bf16 %v323_v63, %v322_v6 }
  0xfa   :  { %v746_v0 = vpop.f32.mrf.mxu0  ;;  %v321_v3 = vld [vmem:[#allocation2 + $0x28] sm:$0xff] }
  0xfb   :  { %306 = vst.msk [vmem:[#allocation2 + $0x48] sm:$0xff] %vm22_vm0, %v289_v62  ;;  %v294_v4 = vadd.f32 %v746_v0, %v53_v61  ;;  %v334_v5 = vpack.c.bf16 %v321_v3, %v320_v2 }
  0xfc   :  { %v265_v7 = vpop.f32.mrf.mxu0  ;;  %v326_v20 = vld [vmem:[#allocation2 + $0x50] sm:$0xff] }
  0xfd   :  { %311 = vst.msk [vmem:[#allocation2 + $0x70] sm:$0xff] %vm22_vm0, %v294_v4  ;;  %v292_v10 = vadd.f32 %v265_v7, %v51_v1  ;;  %756 = vmatprep.mubr.msk.bf16.mxu1 %vm22_vm0, %v334_v5 }
  0xfe   :  { %v747_v11 = vpop.f32.mrf.mxu0  ;;  %757 = vmatmul.mubr.msk.bf16.gmra.mxu1 %vm22_vm0, %v335_v9  ;;  %v324_v17 = vld [vmem:[#allocation2 + $0x40] sm:$0xff] }
  0xff   :  { %309 = vst.msk [vmem:[#allocation2 + $0x60] sm:$0xff] %vm22_vm0, %v292_v10  ;;  %v295_v13 = vadd.f32 %v747_v11, %v54_v8 }
 0x100   :  { %v268_v14 = vpop.f32.mrf.mxu0  ;;  %v327_v16 = vld [vmem:[#allocation2 + $0x58] sm:$0xff] }
 0x101   :  { %312 = vst.msk [vmem:[#allocation2 + $0x78] sm:$0xff] %vm22_vm0, %v295_v13  ;;  %v293_v15 = vadd.f32 %v268_v14, %v52_v12  ;;  %v337_v21 = vpack.c.bf16 %v327_v16, %v326_v20 }
 0x102   :  { %v325_v18 = vld [vmem:[#allocation2 + $0x48] sm:$0xff] }
 0x103   :  { %310 = vst.msk [vmem:[#allocation2 + $0x68] sm:$0xff] %vm22_vm0, %v293_v15  ;;  %v336_v19 = vpack.c.bf16 %v325_v18, %v324_v17 }
 0x104   :  { %v330_v26 = vld [vmem:[#allocation2 + $0x70] sm:$0xff] }
 0x105   :  { %760 = vmatprep.mubr.msk.bf16.mxu1 %vm22_vm0, %v336_v19 }
 0x106   :  { %761 = vmatmul.mubr.msk.bf16.gmra.mxu1 %vm22_vm0, %v337_v21  ;;  %v328_v23 = vld [vmem:[#allocation2 + $0x60] sm:$0xff] }
 0x108   :  { %v331_v22 = vld [vmem:[#allocation2 + $0x78] sm:$0xff] }
 0x109   :  { %v339_v27 = vpack.c.bf16 %v331_v22, %v330_v26 }
 0x10a   :  { %v329_v24 = vld [vmem:[#allocation2 + $0x68] sm:$0xff] }
 0x10b   :  { %v338_v25 = vpack.c.bf16 %v329_v24, %v328_v23 }
 0x10d   :  { %764 = vmatprep.mubr.msk.bf16.mxu1 %vm22_vm0, %v338_v25 }
 0x10e   :  { %765 = vmatmul.mubr.msk.bf16.gmra.mxu1 %vm22_vm0, %v339_v27 }
 0x1b6   :  { %v754_v28 = vpop.f32.mrf.mxu1 }
 0x1b7   :  { %v430_v31 = vadd.f32 %v754_v28, %v600_v29 }
 0x1b8   :  { %v421_v30 = vpop.f32.mrf.mxu1 }
 0x1b9   :  { %v422_v33 = vadd.f32 %v600_v29, %v421_v30  ;;  %v486_v36 = vmax.f32 %v430_v31, 0.0 }
 0x1ba   :  { %v755_v32 = vpop.f32.mrf.mxu1 }
 0x1bb   :  { %v433_v34 = vadd.f32 %v755_v32, %v600_v29  ;;  %v484_v40 = vmax.f32 %v422_v33, 0.0 }
 0x1bc   :  { %v424_v35 = vpop.f32.mrf.mxu1 }
 0x1bd   :  { %v487_v37 = vmax.f32 %v433_v34, 0.0  ;;  %v425_v38 = vadd.f32 %v600_v29, %v424_v35 }
 0x1be   :  { %v758_v39 = vpop.f32.mrf.mxu1 }
 0x1bf   :  { %v651_v41 = vpack.c.bf16 %v487_v37, %v486_v36  ;;  %v485_v42 = vmax.f32 %v425_v38, 0.0  ;;  %v446_v45 = vadd.f32 %v758_v39, %v600_v29 }
 0x1c0   :  { %v437_v43 = vpop.f32.mrf.mxu1 }
 0x1c1   :  { %683 = vst [vmem:[%s939_s4 + $0x8] sm:$0xff] %v651_v41   ;;  %v646_v44 = vpack.c.bf16 %v485_v42, %v484_v40  ;;  %v438_v47 = vadd.f32 %v600_v29, %v437_v43  ;;  %v490_v50 = vmax.f32 %v446_v45, 0.0 }
 0x1c2   :  { %v759_v46 = vpop.f32.mrf.mxu1 }
 0x1c3   :  { %647 = vst [vmem:[%s939_s4] sm:$0xff] %v646_v44   ;;  %v449_v48 = vadd.f32 %v759_v46, %v600_v29  ;;  %v488_v54 = vmax.f32 %v438_v47, 0.0 }
 0x1c4   :  { %v440_v49 = vpop.f32.mrf.mxu1 }
 0x1c5   :  { %v491_v51 = vmax.f32 %v449_v48, 0.0  ;;  %v441_v52 = vadd.f32 %v600_v29, %v440_v49 }
 0x1c6   :  { %v762_v53 = vpop.f32.mrf.mxu1 }
 0x1c7   :  { %v661_v55 = vpack.c.bf16 %v491_v51, %v490_v50  ;;  %v489_v56 = vmax.f32 %v441_v52, 0.0  ;;  %v462_v59 = vadd.f32 %v762_v53, %v600_v29 }
 0x1c8   :  { %v453_v57 = vpop.f32.mrf.mxu1 }
 0x1c9   :  { %685 = vst [vmem:[%s939_s4 + $0x18] sm:$0xff] %v661_v55   ;;  %v656_v58 = vpack.c.bf16 %v489_v56, %v488_v54  ;;  %v454_v61 = vadd.f32 %v600_v29, %v453_v57  ;;  %v494_v0 = vmax.f32 %v462_v59, 0.0 }
 0x1ca   :  { %v763_v60 = vpop.f32.mrf.mxu1 }
 0x1cb   :  { %684 = vst [vmem:[%s939_s4 + $0x10] sm:$0xff] %v656_v58   ;;  %v465_v62 = vadd.f32 %v763_v60, %v600_v29  ;;  %v492_v4 = vmax.f32 %v454_v61, 0.0 }
 0x1cc   :  { %v456_v63 = vpop.f32.mrf.mxu1 }
 0x1cd   :  { %v495_v1 = vmax.f32 %v465_v62, 0.0  ;;  %v457_v2 = vadd.f32 %v600_v29, %v456_v63 }
 0x1ce   :  { %v766_v3 = vpop.f32.mrf.mxu1 }
 0x1cf   :  { %v671_v5 = vpack.c.bf16 %v495_v1, %v494_v0  ;;  %v493_v6 = vmax.f32 %v457_v2, 0.0  ;;  %v478_v9 = vadd.f32 %v766_v3, %v600_v29 }
 0x1d0   :  { %v469_v7 = vpop.f32.mrf.mxu1 }
 0x1d1   :  { %687 = vst [vmem:[%s939_s4 + $0x28] sm:$0xff] %v671_v5   ;;  %v666_v8 = vpack.c.bf16 %v493_v6, %v492_v4  ;;  %v470_v11 = vadd.f32 %v600_v29, %v469_v7  ;;  %v498_v14 = vmax.f32 %v478_v9, 0.0 }
 0x1d2   :  { %v767_v10 = vpop.f32.mrf.mxu1 }
 0x1d3   :  { %686 = vst [vmem:[%s939_s4 + $0x20] sm:$0xff] %v666_v8   ;;  %v481_v12 = vadd.f32 %v767_v10, %v600_v29  ;;  %v496_v17 = vmax.f32 %v470_v11, 0.0 }
 0x1d4   :  { %v472_v13 = vpop.f32.mrf.mxu1 }
 0x1d5   :  { %v499_v15 = vmax.f32 %v481_v12, 0.0  ;;  %v473_v16 = vadd.f32 %v600_v29, %v472_v13 }
 0x1d7   :  { %v681_v18 = vpack.c.bf16 %v499_v15, %v498_v14  ;;  %v497_v19 = vmax.f32 %v473_v16, 0.0 }
 0x1d9   :  { %689 = vst [vmem:[%s939_s4 + $0x38] sm:$0xff] %v681_v18   ;;  %v676_v20 = vpack.c.bf16 %v497_v19, %v496_v17 }
 0x1db   :  { %688 = vst [vmem:[%s939_s4 + $0x30] sm:$0xff] %v676_v20  }

</bundles_post_ra>
